<compile_context>
chip_gen: v7x
topology: tpu7x:2x2x1
jax: 0.10.0
libtpu: 0.0.40
codegen_flags: <defaults>
</compile_context>

<pallas_src>
import jax
import jax.numpy as jnp
from typing import NamedTuple
from jax.experimental import pallas as pl
from jax.experimental.pallas import tpu as pltpu


_VMEM_LIMIT_BYTES = 48 * 1024 * 1024  # safe on v5e/v6e (128 MiB) and v7x (64 MiB/TC)


def _round_up(a, m):
    return ((a + m - 1) // m) * m


# ---------------------------------------------------------------------------
# Kernels
# ---------------------------------------------------------------------------
def _gated_dense_kernel_acc(x_ref, wf_ref, bf_ref, o_ref, acc_ref):
    """Multi-step K reduction: grid=(M_tiles, N_tiles, K_tiles), K last ('arbitrary')."""
    k = pl.program_id(2)

    @pl.when(k == 0)
    def _init():
        acc_ref[...] = jnp.zeros_like(acc_ref)

    # Single fused MXU matmul per step: wf tile = [Wh_tile | Wg_tile] -> (tm, 2*tn).
    acc_ref[...] += jnp.dot(
        x_ref[...], wf_ref[...], preferred_element_type=jnp.float32
    )

    @pl.when(k == pl.num_programs(2) - 1)
    def _finalize():
        tn = o_ref.shape[1]
        hg = acc_ref[...] + bf_ref[...]  # bias applied exactly once, in f32
        h = hg[:, :tn]
        g = hg[:, tn:]
        # TODO(synk): apply a configured `activation` callable to h here (default None).
        o_ref[...] = (h * jax.nn.sigmoid(g)).astype(o_ref.dtype)


def _gated_dense_kernel_single_k(x_ref, wf_ref, bf_ref, o_ref):
    """Small-K fast path: whole K in one block -> no accumulator scratch / K loop."""
    tn = o_ref.shape[1]
    hg = jnp.dot(x_ref[...], wf_ref[...], preferred_element_type=jnp.float32)
    hg = hg + bf_ref[...]
    h = hg[:, :tn]
    g = hg[:, tn:]
    # TODO(synk): apply a configured `activation` callable to h here (default None).
    o_ref[...] = (h * jax.nn.sigmoid(g)).astype(o_ref.dtype)


# ---------------------------------------------------------------------------
# One-time parameter fusion (do NOT put this in the hot path)
# ---------------------------------------------------------------------------
class FusedGatedDense(NamedTuple):
    w_f: jax.Array  # (Kp, 2*Np), per-N-tile fused [Wh | Wg], compute dtype (bf16)
    b_f: jax.Array  # (1, 2*Np), float32
    n: int
    k: int
    tn: int
    tk: int


def fuse_gated_dense_params(w_h, b_h, w_g, b_g, *, tn=None, tk=None,
                            compute_dtype=jnp.bfloat16):
    """Pad + fuse the two Linear layers once. w_h/w_g: (K, N); b_h/b_g: (1, N) or (N,)."""
    K, N = w_h.shape
    assert w_g.shape == (K, N)
    b_h = jnp.reshape(b_h, (1, N))
    b_g = jnp.reshape(b_g, (1, N))

    # N tiling: lane-dense (multiple of 128), capped at 512. If the whole N would be
    # a single tile but has >=256 lanes, split it so the 'parallel' N axis has >=2
    # tiles (keeps both v7x TensorCores busy for small-batch shapes).
    if tn is None:
        tn = min(_round_up(N, 128), 512)
        Np = _round_up(N, tn)
        if Np // tn < 2 and Np >= 256:
            tn = _round_up(-(-Np // 2), 128)
    Np = _round_up(N, tn)
    nN = Np // tn

    # K tiling: collapse the K grid axis when the whole (padded) K fits one block
    # (decode-style fast path); otherwise stream 1024-deep K blocks.
    if tk is None:
        k128 = _round_up(K, 128)
        tk = k128 if k128 <= 2048 else 1024
    Kp = _round_up(K, tk)

    whp = jnp.pad(w_h, ((0, Kp - K), (0, Np - N)))
    wgp = jnp.pad(w_g, ((0, Kp - K), (0, Np - N)))
    bhp = jnp.pad(b_h, ((0, 0), (0, Np - N)))
    bgp = jnp.pad(b_g, ((0, 0), (0, Np - N)))

    # Per-N-tile fusion so every (tk, 2*tn) block is [Wh_tile | Wg_tile] -> one MXU dot.
    w_f = jnp.concatenate(
        [whp.reshape(Kp, nN, tn), wgp.reshape(Kp, nN, tn)], axis=-1
    ).reshape(Kp, 2 * Np).astype(compute_dtype)
    b_f = jnp.concatenate(
        [bhp.reshape(1, nN, tn), bgp.reshape(1, nN, tn)], axis=-1
    ).reshape(1, 2 * Np).astype(jnp.float32)

    return FusedGatedDense(w_f=w_f, b_f=b_f, n=N, k=K, tn=tn, tk=tk)


# ---------------------------------------------------------------------------
# Hot-path apply
# ---------------------------------------------------------------------------
def gated_dense_fused(x, params: FusedGatedDense, *, tm=None, out_dtype=None):
    """x: (B, K). Uses pre-fused/padded weights; only x is padded+cast per call."""
    B, K = x.shape
    assert K == params.k, f"expected K={params.k}, got {K}"
    N, tn, tk = params.n, params.tn, params.tk
    Kp, two_Np = params.w_f.shape
    Np = two_Np // 2
    nN = Np // tn
    out_dtype = out_dtype or x.dtype
    compute_dtype = params.w_f.dtype
    cd_size = jnp.dtype(compute_dtype).itemsize

    # M tiling: respect the packed sublane tile (16 for bf16, 8 for f32), cap at 512.
    sub = 16 if cd_size == 2 else 8
    if tm is None:
        tm = min(_round_up(B, sub), 512)
        Bp = _round_up(B, tm)
        # If neither parallel axis would have >=2 tiles, split M for megacore use.
        if Bp // tm < 2 and nN < 2 and Bp >= 2 * sub:
            tm = _round_up(-(-Bp // 2), sub)
    Bp = _round_up(B, tm)

    xp = jnp.pad(x, ((0, Bp - B), (0, Kp - K))).astype(compute_dtype)

    n_k = Kp // tk
    cost = pl.CostEstimate(
        flops=2 * Bp * Kp * (2 * Np),
        transcendentals=Bp * Np,  # sigmoid
        bytes_accessed=(xp.size * cd_size
                        + params.w_f.size * cd_size
                        + params.b_f.size * 4
                        + Bp * Np * jnp.dtype(out_dtype).itemsize),
    )

    if n_k == 1:
        # Fast path: one dot straight into the epilogue, no accumulator traffic.
        out_p = pl.pallas_call(
            _gated_dense_kernel_single_k,
            out_shape=jax.ShapeDtypeStruct((Bp, Np), out_dtype),
            grid=(Bp // tm, nN),
            in_specs=[
                pl.BlockSpec((tm, Kp), lambda i, j: (i, 0)),        # x slab
                pl.BlockSpec((Kp, 2 * tn), lambda i, j: (0, j)),    # fused weight slab
                pl.BlockSpec((1, 2 * tn), lambda i, j: (0, j)),     # fused bias tile
            ],
            out_specs=pl.BlockSpec((tm, tn), lambda i, j: (i, j)),  # lane-dense output
            compiler_params=pltpu.CompilerParams(
                dimension_semantics=("parallel", "parallel"),
                vmem_limit_bytes=_VMEM_LIMIT_BYTES,
            ),
            cost_estimate=cost,
        )(xp, params.w_f, params.b_f)
    else:
        out_p = pl.pallas_call(
            _gated_dense_kernel_acc,
            out_shape=jax.ShapeDtypeStruct((Bp, Np), out_dtype),
            grid=(Bp // tm, nN, n_k),
            in_specs=[
                pl.BlockSpec((tm, tk), lambda i, j, k: (i, k)),        # x tile
                pl.BlockSpec((tk, 2 * tn), lambda i, j, k: (k, j)),    # fused weight tile
                pl.BlockSpec((1, 2 * tn), lambda i, j, k: (0, j)),     # fused bias tile
            ],
            out_specs=pl.BlockSpec((tm, tn), lambda i, j, k: (i, j)),
            scratch_shapes=[pltpu.VMEM((tm, 2 * tn), jnp.float32)],
            compiler_params=pltpu.CompilerParams(
                dimension_semantics=("parallel", "parallel", "arbitrary"),
                vmem_limit_bytes=_VMEM_LIMIT_BYTES,
            ),
            cost_estimate=cost,
        )(xp, params.w_f, params.b_f)
        # NOTE: if a profile shows exposed weight-DMA, add
        # pipeline_mode=pl.Buffered(3) on the weight BlockSpec and sweep 2 vs 3.

    return out_p[:B, :N]


def gated_dense(x, w_h, b_h, w_g, b_g, *, compute_dtype=jnp.bfloat16, **kw):
    """One-shot convenience wrapper. For repeated calls, fuse params once with
    fuse_gated_dense_params() and call gated_dense_fused() to avoid re-padding
    and re-fusing the weights through HBM on every invocation."""
    params = fuse_gated_dense_params(w_h, b_h, w_g, b_g, compute_dtype=compute_dtype)
    return gated_dense_fused(x, params, **kw)


# ---------------------------------------------------------------------------
# Init + reference + self-test
# ---------------------------------------------------------------------------
def init_linear_params(key, input_size, output_size):
    # Mirror PyTorch nn.Linear default init: U(-1/sqrt(in), 1/sqrt(in)).
    kw, kb = jax.random.split(key)
    bound = 1.0 / jnp.sqrt(jnp.float32(input_size))
    # Stored already transposed: (input_size, output_size).
    w = jax.random.uniform(kw, (input_size, output_size), jnp.float32, -bound, bound)
    b = jax.random.uniform(kb, (1, output_size), jnp.float32, -bound, bound)
    return w, b


def _reference(x, w_h, b_h, w_g, b_g):
    return (x @ w_h + b_h) * jax.nn.sigmoid(x @ w_g + b_g)


if __name__ == "__main__":
    key = jax.random.PRNGKey(0)
    k_x, k_h, k_g, k2_x, k2_h, k2_g, k3_x = jax.random.split(key, 7)

    # --- Test 1: small module shapes (batch=8, in=32, out=32), f32 compute,
    #     single-K fast path, tight tolerance.
    batch, input_size, output_size = 8, 32, 32
    x = jax.random.normal(k_x, (batch, input_size), jnp.float32)
    w_h, b_h = init_linear_params(k_h, input_size, output_size)
    w_g, b_g = init_linear_params(k_g, input_size, output_size)

    out = jax.block_until_ready(
        gated_dense(x, w_h, b_h, w_g, b_g, compute_dtype=jnp.float32)
    )
    ref = _reference(x, w_h, b_h, w_g, b_g)
    assert out.shape == (batch, output_size)
    assert jnp.allclose(out, ref, atol=1e-5, rtol=1e-5)

    # --- Test 2: non-aligned shapes, bf16 compute, fuse-once + reuse, forced
    #     multi-step K (tk=256 -> 3 K steps) to exercise the accumulator kernel.
    B2, K2, N2 = 24, 640, 200
    x2 = jax.random.normal(k2_x, (B2, K2), jnp.float32)
    w_h2, b_h2 = init_linear_params(k2_h, K2, N2)
    w_g2, b_g2 = init_linear_params(k2_g, K2, N2)

    fused2 = fuse_gated_dense_params(w_h2, b_h2, w_g2, b_g2,
                                     tk=256, compute_dtype=jnp.bfloat16)
    out2 = jax.block_until_ready(gated_dense_fused(x2, fused2))
    ref2 = _reference(x2, w_h2, b_h2, w_g2, b_g2)
    assert out2.shape == (B2, N2)
    assert jnp.allclose(out2, ref2, atol=3e-2, rtol=3e-2)  # bf16 operand tolerance

    # Reuse the same fused params with a fresh activation (hot-path pattern).
    x3 = jax.random.normal(k3_x, (B2, K2), jnp.float32)
    out3 = jax.block_until_ready(gated_dense_fused(x3, fused2))
    ref3 = _reference(x3, w_h2, b_h2, w_g2, b_g2)
    assert out3.shape == (B2, N2)
    assert jnp.allclose(out3, ref3, atol=3e-2, rtol=3e-2)

    print("KERNEL_OK")
</pallas_src>

<mosaic_0001>
module attributes {stable_mosaic.version = 11 : i64} {
  func.func @_gated_dense_kernel_single_k(%arg0: i32, %arg1: i32, %arg2: memref<8x128xf32, #tpu.memory_space<vmem>>, %arg3: memref<128x256xf32, #tpu.memory_space<vmem>>, %arg4: memref<1x256xf32, #tpu.memory_space<vmem>>, %arg5: memref<8x128xf32, #tpu.memory_space<vmem>>) attributes {dimension_semantics = [#tpu.dimension_semantics<parallel>, #tpu.dimension_semantics<parallel>], iteration_bounds = array<i64: 1, 1>, scalar_prefetch = 0 : i64, scratch_operands = 0 : i64, tpu.core_type = #tpu.core_type<tc>, window_params = [{transform_indices = @transform_0, window_bounds = array<i64: 8, 128>}, {transform_indices = @transform_1, window_bounds = array<i64: 128, 256>}, {transform_indices = @transform_2, window_bounds = array<i64: 1, 256>}, {transform_indices = @transform_3, window_bounds = array<i64: 8, 128>}]} {
    %c0 = arith.constant 0 : index
    %c0_0 = arith.constant 0 : index
    %0 = vector.load %arg2[%c0, %c0_0] : memref<8x128xf32, #tpu.memory_space<vmem>>, vector<8x128xf32>
    %c0_1 = arith.constant 0 : index
    %c0_2 = arith.constant 0 : index
    %1 = vector.load %arg3[%c0_1, %c0_2] : memref<128x256xf32, #tpu.memory_space<vmem>>, vector<128x256xf32>
    %cst = arith.constant dense<0.000000e+00> : vector<8x256xf32>
    %2 = tpu.matmul %0, %1, %cst {dimension_numbers = #tpu.dot_dimension_numbers<[1], [0], [0], [1], [0, 0, 1, 1], [], []>} : vector<8x128xf32>, vector<128x256xf32>, vector<8x256xf32> -> vector<8x256xf32>
    %c0_3 = arith.constant 0 : index
    %c0_4 = arith.constant 0 : index
    %3 = vector.load %arg4[%c0_3, %c0_4] : memref<1x256xf32, #tpu.memory_space<vmem>>, vector<1x256xf32>
    %4 = vector.broadcast %3 : vector<1x256xf32> to vector<8x256xf32>
    %5 = arith.addf %2, %4 : vector<8x256xf32>
    %6 = vector.extract_strided_slice %5 {offsets = [0, 0], sizes = [8, 128], strides = [1, 1]} : vector<8x256xf32> to vector<8x128xf32>
    %7 = vector.extract_strided_slice %5 {offsets = [0, 128], sizes = [8, 128], strides = [1, 1]} : vector<8x256xf32> to vector<8x128xf32>
    %8 = arith.negf %7 : vector<8x128xf32>
    %9 = math.exp %8 : vector<8x128xf32>
    %cst_5 = arith.constant 1.000000e+00 : f32
    %10 = vector.broadcast %cst_5 : f32 to vector<8x128xf32>
    %11 = arith.addf %10, %9 : vector<8x128xf32>
    %12 = arith.divf %10, %11 : vector<8x128xf32>
    %13 = arith.mulf %6, %12 : vector<8x128xf32>
    %c0_6 = arith.constant 0 : index
    %c0_7 = arith.constant 0 : index
    %14 = vector.load %arg5[%c0_6, %c0_7] : memref<8x128xf32, #tpu.memory_space<vmem>>, vector<8x128xf32>
    tpu.vector_store %arg5[%c0_6, %c0_7], %13 {strides = array<i32>} : memref<8x128xf32, #tpu.memory_space<vmem>>, vector<8x128xf32>,
    return
  }
  func.func @transform_0(%arg0: i32, %arg1: i32) -> (i32, i32) {
    %c0_i32 = arith.constant 0 : i32
    %c0_i32_0 = arith.constant 0 : i32
    return %arg0, %c0_i32 : i32, i32
  }
  func.func @transform_1(%arg0: i32, %arg1: i32) -> (i32, i32) {
    %c0_i32 = arith.constant 0 : i32
    %c0_i32_0 = arith.constant 0 : i32
    return %c0_i32, %arg1 : i32, i32
  }
  func.func @transform_2(%arg0: i32, %arg1: i32) -> (i32, i32) {
    %c0_i32 = arith.constant 0 : i32
    %c0_i32_0 = arith.constant 0 : i32
    return %c0_i32, %arg1 : i32, i32
  }
  func.func @transform_3(%arg0: i32, %arg1: i32) -> (i32, i32) {
    %c0_i32 = arith.constant 0 : i32
    return %arg0, %arg1 : i32, i32
  }
}

</mosaic_0001>

<bundles_post_ra>
// kernel: tpu_custom_call.1
= control target key start
LH: loop header
LB: loop body
LE: loop exit
PB: predicated region body
PF: predicated region fallthrough
CT: control target
= control target key end

     0   :  { %8 = vsyncpa [#allocation3], 0  ;;  %s368_s0 = inlined_call_operand.hbm [shape: f32[8,128], index: 0, kind: input, shape index: {}]   ;;  %s369_s1 = inlined_call_operand.hbm [shape: f32[128,256], index: 1, kind: input, shape index: {}]   ;;  %s370_s2 = inlined_call_operand.vmem [shape: f32[1,256], index: 2, kind: input, shape index: {}]   ;;  %s371_s3 = inlined_call_operand.hbm [shape: f32[8,128], index: 3, kind: output, shape index: {}]  }
   0x1   :  { %9 = vsyncpa [#allocation6], 0 }
   0x2   :  { %10 = vsyncpa [#allocation4], 0  ;;  %s296_s12 = smov [#allocation2]   ;;  %s297_s14 = smov [#allocation5]  }
   0x3   :  { %s17_s13 = sshll.u32 %s296_s12, 4  ;;  %s26_s15 = sshll.u32 %s297_s14, 4  ;;  %s18_s13 = int_to_ptr.vmem [resolvable:$true] %s17_s13  ;;  %s322_s15 = int_to_ptr.vmem [resolvable:$true] %s26_s15 }
   0x4   :  { %s224_s18 = scalar_lea.hbm %s368_s0, 128 }
   0x5   :  { %p225_p0 = scmp.ne.s32.totalorder %s368_s0, %s224_s18  ;;  %p228_p1 = scmp.lt.u32.totalorder %s224_s18, %s368_s0 }
   0x7   :  { %p230_p2 = pnand %p228_p1, %p225_p0 }
   0x9   :  { %233 = shalt.err (!%p230_p2)
}
   0xa   :  { %s234_s23 = scalar_lea.vmem %s18_s13, 128  ;;  %p239_p4 = scmp.lt.s32.totalorder %s18_s13, %s18_s13 }
   0xb   :  { %p235_p3 = scmp.ne.s32.totalorder %s18_s13, %s234_s23  ;;  %p240_p5 = scmp.lt.s32.totalorder %s234_s23, %s234_s23 }
   0xd   :  { %p241_p6 = por %p240_p5, %p239_p4 }
   0xf   :  { %p242_p7 = pnand %p241_p6, %p235_p3 }
  0x11   :  { %245 = shalt.err (!%p242_p7)
}
  0x12   :  { %20 = dma.hbm_to_vmem [thread:$0]  %s368_s0, 128, %s18_s13, [#allocation3]  }
  0x13   :  { %s246_s28 = scalar_lea.hbm %s369_s1, 4096 }
  0x14   :  { %p247_p8 = scmp.ne.s32.totalorder %s369_s1, %s246_s28  ;;  %p250_p9 = scmp.lt.u32.totalorder %s246_s28, %s369_s1 }
  0x16   :  { %p252_p10 = pnand %p250_p9, %p247_p8 }
  0x18   :  { %255 = shalt.err (!%p252_p10)
}
  0x19   :  { %s256_s6 = scalar_lea.vmem %s322_s15, 4096  ;;  %p261_p12 = scmp.lt.s32.totalorder %s322_s15, %s322_s15 }
  0x1a   :  { %p257_p11 = scmp.ne.s32.totalorder %s322_s15, %s256_s6  ;;  %p262_p13 = scmp.lt.s32.totalorder %s256_s6, %s256_s6 }
  0x1c   :  { %p263_p0 = por %p262_p13, %p261_p12 }
  0x1e   :  { %p264_p1 = pnand %p263_p0, %p257_p11 }
  0x20   :  { %267 = shalt.err (!%p264_p1)
}
  0x21   :  { %s298_s0 = smov 256   ;;  %s299_s7 = smov 16  }
  0x22   :  { %32 = dma.hbm_to_vmem [thread:$0]  %s369_s1, 4096, %s322_s15, [#allocation6], %s298_s0, %s298_s0, %s299_s7  }
  0x23   :  { %290 = dma.done.wait [#allocation3], 128  }
  0x24   :  { %291 = vsyncadd [#allocation3], 4294967168 }
  0x25   :  { %292 = dma.done.wait [#allocation6], 4096  }
  0x26   :  { %293 = vsyncadd [#allocation6], 4294963200  ;;  %v300_v0 = vmov 0.0   ;;  %v43_v1 = vld [vmem:[#allocation5 + $0x8] sm:$0xff]  ;;  %v45_v2 = vld [vmem:[#allocation5 + $0x18] sm:$0xff]  ;;  %v76_v50 = vlaneseq  ;;  %s301_s11 = smov [#allocation7]  }
  0x27   :  { %150 = vmatprep.mubr.f32.mxu0 %v300_v0  ;;  %v42_v3 = vld [vmem:[#allocation5] sm:$0xff]  ;;  %v182_v4 = vpack.c.bf16 %v45_v2, %v43_v1  ;;  %v44_v5 = vld [vmem:[#allocation5 + $0x10] sm:$0xff]  ;;  %v47_v6 = vld [vmem:[#allocation5 + $0x28] sm:$0xff]  ;;  %s171_s12 = sshll.u32 %s301_s11, 4  ;;  %s172_s12 = int_to_ptr.vmem [resolvable:$true] %s171_s12 }
  0x28   :  { %v49_v7 = vld [vmem:[#allocation5 + $0x38] sm:$0xff]  ;;  %v184_v8 = vpack.c.bf16 %v44_v5, %v42_v3  ;;  %v46_v10 = vld [vmem:[#allocation5 + $0x20] sm:$0xff]  ;;  %v48_v11 = vld [vmem:[#allocation5 + $0x30] sm:$0xff]  ;;  %v77_v51 = vshrl.u32 %v76_v50, 7  ;;  %s268_s13 = scalar_lea.vmem %s172_s12, 128  ;;  %p273_p3 = scmp.lt.s32.totalorder %s172_s12, %s172_s12 }
  0x29   :  { %v186_v9 = vpack.c.bf16 %v49_v7, %v47_v6  ;;  %v51_v12 = vld [vmem:[#allocation5 + $0x48] sm:$0xff]  ;;  %183 = vmatprep.subr.bf16.mxu0 %v182_v4  ;;  %v53_v13 = vld [vmem:[#allocation5 + $0x58] sm:$0xff]  ;;  %v188_v14 = vpack.c.bf16 %v48_v11, %v46_v10  ;;  %v50_v16 = vld [vmem:[#allocation5 + $0x40] sm:$0xff]  ;;  %p269_p2 = scmp.ne.s32.totalorder %s172_s12, %s268_s13  ;;  %p274_p4 = scmp.lt.s32.totalorder %s268_s13, %s268_s13 }
  0x2a   :  { %185 = vmatpush1.bf16.msra.mxu0 %v184_v8  ;;  %v190_v15 = vpack.c.bf16 %v53_v13, %v51_v12  ;;  %v52_v17 = vld [vmem:[#allocation5 + $0x50] sm:$0xff]  ;;  %v55_v18 = vld [vmem:[#allocation5 + $0x68] sm:$0xff]  ;;  %v57_v19 = vld [vmem:[#allocation5 + $0x78] sm:$0xff]  ;;  %v82_v52 = vsub.s32 1, %v77_v51  ;;  %v78_v61 = vsub.s32 0, %v77_v51 }
  0x2b   :  { %187 = vmatprep.subr.bf16.mxu0 %v186_v9  ;;  %v192_v20 = vpack.c.bf16 %v52_v17, %v50_v16  ;;  %v194_v21 = vpack.c.bf16 %v57_v19, %v55_v18  ;;  %v54_v22 = vld [vmem:[#allocation5 + $0x60] sm:$0xff]  ;;  %v56_v23 = vld [vmem:[#allocation5 + $0x70] sm:$0xff]  ;;  %v59_v24 = vld [vmem:[#allocation5 + $0x88] sm:$0xff]  ;;  %p275_p5 = por %p274_p4, %p273_p3 }
  0x2c   :  { %v61_v25 = vld [vmem:[#allocation5 + $0x98] sm:$0xff]  ;;  %v196_v26 = vpack.c.bf16 %v56_v23, %v54_v22  ;;  %v58_v28 = vld [vmem:[#allocation5 + $0x80] sm:$0xff]  ;;  %v60_v29 = vld [vmem:[#allocation5 + $0x90] sm:$0xff] }
  0x2d   :  { %v198_v27 = vpack.c.bf16 %v61_v25, %v59_v24  ;;  %v63_v30 = vld [vmem:[#allocation5 + $0xa8] sm:$0xff]  ;;  %v65_v31 = vld [vmem:[#allocation5 + $0xb8] sm:$0xff]  ;;  %v200_v32 = vpack.c.bf16 %v60_v29, %v58_v28  ;;  %v62_v34 = vld [vmem:[#allocation5 + $0xa0] sm:$0xff]  ;;  %p276_p6 = pnand %p275_p5, %p269_p2 }
  0x2e   :  { %189 = vmatpush1.bf16.msra.mxu0 %v188_v14  ;;  %v202_v33 = vpack.c.bf16 %v65_v31, %v63_v30  ;;  %v64_v35 = vld [vmem:[#allocation5 + $0xb0] sm:$0xff]  ;;  %v67_v36 = vld [vmem:[#allocation5 + $0xc8] sm:$0xff]  ;;  %v69_v37 = vld [vmem:[#allocation5 + $0xd8] sm:$0xff] }
  0x2f   :  { %191 = vmatprep.subr.bf16.mxu0 %v190_v15  ;;  %v204_v38 = vpack.c.bf16 %v64_v35, %v62_v34  ;;  %v206_v39 = vpack.c.bf16 %v69_v37, %v67_v36  ;;  %v66_v40 = vld [vmem:[#allocation5 + $0xc0] sm:$0xff]  ;;  %v68_v41 = vld [vmem:[#allocation5 + $0xd0] sm:$0xff]  ;;  %v71_v42 = vld [vmem:[#allocation5 + $0xe8] sm:$0xff] }
  0x30   :  { %v73_v43 = vld [vmem:[#allocation5 + $0xf8] sm:$0xff]  ;;  %v208_v44 = vpack.c.bf16 %v68_v41, %v66_v40  ;;  %v70_v46 = vld [vmem:[#allocation5 + $0xe0] sm:$0xff]  ;;  %v72_v47 = vld [vmem:[#allocation5 + $0xf0] sm:$0xff] }
  0x31   :  { %v210_v45 = vpack.c.bf16 %v73_v43, %v71_v42  ;;  %v212_v48 = vpack.c.bf16 %v72_v47, %v70_v46  ;;  %v41_v49 = vld [vmem:[#allocation2] sm:$0xff] }
  0x32   :  { %193 = vmatpush1.bf16.msra.mxu0 %v192_v20  ;;  %v74_v53 = vld [vmem:[%s370_s2] sm:$0x3] }
  0x33   :  { %195 = vmatprep.subr.bf16.mxu0 %v194_v21  ;;  %v83_v54 = vrot.slane %v74_v53, %v82_v52  ;;  %v79_v62 = vrot.slane %v74_v53, %v78_v61 }
  0x36   :  { %197 = vmatpush1.bf16.msra.mxu0 %v196_v26 }
  0x37   :  { %199 = vmatprep.subr.bf16.mxu0 %v198_v27 }
  0x3a   :  { %201 = vmatpush1.bf16.msra.mxu0 %v200_v32 }
  0x3b   :  { %203 = vmatprep.subr.bf16.mxu0 %v202_v33 }
  0x3e   :  { %205 = vmatpush1.bf16.msra.mxu0 %v204_v38 }
  0x3f   :  { %207 = vmatprep.subr.bf16.mxu0 %v206_v39 }
  0x42   :  { %209 = vmatpush1.bf16.msra.mxu0 %v208_v44 }
  0x43   :  { %211 = vmatprep.subr.bf16.mxu0 %v210_v45 }
  0x46   :  { %213 = vmatpush1.bf16.msra.mxu0 %v212_v48 }
  0x49   :  { %151 = vmatmul.mubr.f32.vlgmr.msra.gmra.mrb[0].mxu0 %v41_v49 }
 0x11c   :  { %v152_v55 = vpop.f32.mrb[0].mxu0 }
 0x11d   :  { %v154_v56 = vpop.f32.mrb[1].mxu0  ;;  %v153_v63 = vadd.f32 %v152_v55, %v79_v62 }
 0x11e   :  { %v155_v57 = vadd.f32 %v154_v56, %v83_v54 }
 0x120   :  { %v181_v58 = vmul.f32 -1.442695, %v155_v57 }
 0x122   :  { %220 = vpow2.f32 %v181_v58 }
 0x12c   :  { %v221_v59 = vpop.eup %220 }
 0x12d   :  { %v160_v60 = vadd.f32 1.0, %v221_v59 }
 0x12f   :  { %222 = vrcp.f32 %v160_v60 }
 0x139   :  { %v223_v0 = vpop.eup %222 }
 0x13a   :  { %v163_v1 = vmul.f32 %v223_v0, %v153_v63 }
 0x13c   :  { %164 = vst [vmem:[#allocation7] sm:$0xff] %v163_v1 }
 0x13d   :  { %279 = shalt.err (!%p276_p6)
}
 0x13e   :  { %s280_s15 = scalar_lea.hbm %s371_s3, 128 }
 0x13f   :  { %p281_p7 = scmp.ne.s32.totalorder %s371_s3, %s280_s15  ;;  %p284_p8 = scmp.lt.u32.totalorder %s280_s15, %s371_s3 }
 0x141   :  { %p286_p9 = pnand %p284_p8, %p281_p7 }
 0x143   :  { %289 = shalt.err (!%p286_p9)
}
 0x144   :  { %174 = dma.vmem_to_hbm [thread:$0]  %s172_s12, 128, %s371_s3, [#allocation4]  }
 0x145   :  { %294 = dma.done.wait [#allocation4], 128  }
 0x146   :  { %295 = vsyncadd [#allocation4], 4294967168 }
 0x147   :  { %178 = vsyncpa [#allocation3], 1 }
 0x148   :  { %179 = vsyncpa [#allocation6], 1 }
 0x149   :  { %180 = vsyncpa [#allocation4], 1 }

</bundles_post_ra>
